<compile_context>
chip_gen: v7x
topology: tpu7x:2x2x1
jax: 0.10.0
libtpu: 0.0.40
codegen_flags: <defaults>
</compile_context>

<pallas_src>
import functools

import jax
import jax.numpy as jnp
from jax import lax
from jax.experimental import pallas as pl
from jax.experimental.pallas import tpu as pltpu

_LANES = 128  # lane-pad the tiny packed state dim (Dx + Du) up to one vreg row
_MAX_TM = 512     # output tile rows
_MAX_TN = 2048    # output tile cols (lane axis) -> big unmasked store bursts


def _round_up(a, b):
    return ((a + b - 1) // b) * b


def _choose_tiles(n):
    """Pick (tm, tn) satisfying the (8,128) block constraint for any N."""
    tm = min(_MAX_TM, _round_up(max(n, 1), 8))
    if n <= _LANES:
        tn = max(n, 1)                      # equal to full array dim -> legal
    else:
        tn = min(_MAX_TN, _round_up(n, _LANES))
    return tm, tn


def _integer_loss_kernel(d_ref, bi_ref, bj_ref, o_ref):
    """One (tm, tn) output tile of loss = (B * d) @ B^T."""
    d = d_ref[...]                      # (1, 128)   diag weights (zero padded)
    bi = bi_ref[...]                    # (tm, 128)  packed [x | u] rows i
    bj = bj_ref[...]                    # (tn, 128)  packed [x | u] rows j
    a = bi * d                          # VPU broadcast scale (applies Q and R)
    # Contract on the lane axis: (tm,128) x (tn,128)^T -> (tm,tn), f32 acc.
    o_ref[...] = lax.dot_general(
        a, bj, (((1,), (1,)), ((), ())),
        preferred_element_type=jnp.float32)


def _integer_loss_impl(u, x, Q, R):
    """u: (N, Du), x: (N, Dx), Q: (Dx, Dx) diag, R: (Du, Du) diag -> (N, N) f32."""
    N, Du = u.shape
    Nx, Dx = x.shape
    assert N == Nx, "u and x must have the same leading (batch) dimension"
    assert Dx + Du <= _LANES, "packed state dim must fit in one 128-lane row"
    # Caller contract: Q and R are diagonal (true for this module:
    # Q = diag(20, 10), R = I).  No runtime allclose check -- it would force a
    # device->host sync and break jit tracing.

    tm, tn = _choose_tiles(N)

    # Single packed operand B = [x | u | 0...]  -> (N, 128), lane padding only.
    b = jnp.concatenate(
        [x.astype(jnp.float32), u.astype(jnp.float32)], axis=1)      # (N, Dx+Du)
    b_p = jnp.pad(b, ((0, 0), (0, _LANES - (Dx + Du))))               # (N, 128)

    # Packed diag row d = [diag(Q), diag(R), 0...] -> (1, 128).
    d = jnp.concatenate(
        [jnp.diagonal(Q).astype(jnp.float32),
         jnp.diagonal(R).astype(jnp.float32)], axis=0)                # (Dx+Du,)
    d_p = jnp.pad(d, (0, _LANES - (Dx + Du))).reshape(1, _LANES)      # (1, 128)

    grid = (pl.cdiv(N, tm), pl.cdiv(N, tn))

    # Both grid axes are independent output tiles; "parallel" lets megacore
    # parts shard them across TensorCores (v7x).
    return pl.pallas_call(
        _integer_loss_kernel,
        out_shape=jax.ShapeDtypeStruct((N, N), jnp.float32),
        grid=grid,
        in_specs=[
            pl.BlockSpec((1, _LANES), lambda i, j: (0, 0)),        # diag row
            pl.BlockSpec((tm, _LANES), lambda i, j: (i, 0)),       # B rows i
            pl.BlockSpec((tn, _LANES), lambda i, j: (j, 0)),       # B rows j
        ],
        out_specs=pl.BlockSpec((tm, tn), lambda i, j: (i, j)),
        compiler_params=pltpu.CompilerParams(
            dimension_semantics=("parallel", "parallel")),
    )(d_p, b_p, b_p)


integer_loss = jax.jit(_integer_loss_impl)


if __name__ == "__main__":
    # Deterministic parameters from the module's __init__.
    Qx = jnp.array([[20.0, 0.0], [0.0, 10.0]], dtype=jnp.float32)
    Qu = jnp.array([[1.0, 0.0], [0.0, 1.0]], dtype=jnp.float32)

    key = jax.random.PRNGKey(0)

    # Small example inputs: batch of 8 state/control vectors of dim 2.
    ku, kx = jax.random.split(key)
    u = jax.random.normal(ku, (8, 2), dtype=jnp.float32)
    x = jax.random.normal(kx, (8, 2), dtype=jnp.float32)

    loss = integer_loss(u, x, Qx, Qu)
    loss = jax.block_until_ready(loss)
    ref = (x @ Qx) @ x.T + (u @ Qu) @ u.T
    assert loss.shape == (8, 8)
    assert jnp.allclose(loss, ref, atol=1e-4, rtol=1e-4)

    # Ragged batch (exercises the masked edge-tile path, no pad/slice copies).
    ku2, kx2 = jax.random.split(jax.random.PRNGKey(1))
    u2 = jax.random.normal(ku2, (10, 2), dtype=jnp.float32)
    x2 = jax.random.normal(kx2, (10, 2), dtype=jnp.float32)
    loss2 = jax.block_until_ready(integer_loss(u2, x2, Qx, Qu))
    ref2 = (x2 @ Qx) @ x2.T + (u2 @ Qu) @ u2.T
    assert loss2.shape == (10, 10)
    assert jnp.allclose(loss2, ref2, atol=1e-4, rtol=1e-4)

    print("KERNEL_OK")
</pallas_src>

<mosaic_0001>
module attributes {stable_mosaic.version = 11 : i64} {
  func.func @_integer_loss_kernel(%arg0: i32, %arg1: i32, %arg2: memref<1x128xf32, #tpu.memory_space<vmem>>, %arg3: memref<8x128xf32, #tpu.memory_space<vmem>>, %arg4: memref<8x128xf32, #tpu.memory_space<vmem>>, %arg5: memref<8x8xf32, #tpu.memory_space<vmem>>) attributes {dimension_semantics = [#tpu.dimension_semantics<parallel>, #tpu.dimension_semantics<parallel>], iteration_bounds = array<i64: 1, 1>, scalar_prefetch = 0 : i64, scratch_operands = 0 : i64, tpu.core_type = #tpu.core_type<tc>, window_params = [{pipeline_mode = #tpu.pipeline_mode<synchronous>, transform_indices = @transform_0, window_bounds = array<i64: 1, 128>}, {transform_indices = @transform_1, window_bounds = array<i64: 8, 128>}, {transform_indices = @transform_2, window_bounds = array<i64: 8, 128>}, {transform_indices = @transform_3, window_bounds = array<i64: 8, 8>}]} {
    %c0 = arith.constant 0 : index
    %c0_0 = arith.constant 0 : index
    %0 = vector.load %arg2[%c0, %c0_0] : memref<1x128xf32, #tpu.memory_space<vmem>>, vector<1x128xf32>
    %c0_1 = arith.constant 0 : index
    %c0_2 = arith.constant 0 : index
    %1 = vector.load %arg3[%c0_1, %c0_2] : memref<8x128xf32, #tpu.memory_space<vmem>>, vector<8x128xf32>
    %c0_3 = arith.constant 0 : index
    %c0_4 = arith.constant 0 : index
    %2 = vector.load %arg4[%c0_3, %c0_4] : memref<8x128xf32, #tpu.memory_space<vmem>>, vector<8x128xf32>
    %3 = vector.broadcast %0 : vector<1x128xf32> to vector<8x128xf32>
    %4 = arith.mulf %1, %3 : vector<8x128xf32>
    %cst = arith.constant dense<0.000000e+00> : vector<8x8xf32>
    %5 = tpu.matmul %4, %2, %cst {dimension_numbers = #tpu.dot_dimension_numbers<[1], [1], [0], [0], [0, 0, 1, 0], [], []>} : vector<8x128xf32>, vector<8x128xf32>, vector<8x8xf32> -> vector<8x8xf32>
    %c0_5 = arith.constant 0 : index
    %c0_6 = arith.constant 0 : index
    %6 = vector.load %arg5[%c0_5, %c0_6] : memref<8x8xf32, #tpu.memory_space<vmem>>, vector<8x8xf32>
    tpu.vector_store %arg5[%c0_5, %c0_6], %5 {strides = array<i32>} : memref<8x8xf32, #tpu.memory_space<vmem>>, vector<8x8xf32>,
    return
  }
  func.func @transform_0(%arg0: i32, %arg1: i32) -> (i32, i32) {
    %c0_i32 = arith.constant 0 : i32
    %c0_i32_0 = arith.constant 0 : i32
    %c0_i32_1 = arith.constant 0 : i32
    return %c0_i32, %c0_i32_0 : i32, i32
  }
  func.func @transform_1(%arg0: i32, %arg1: i32) -> (i32, i32) {
    %c0_i32 = arith.constant 0 : i32
    %c0_i32_0 = arith.constant 0 : i32
    return %arg0, %c0_i32 : i32, i32
  }
  func.func @transform_2(%arg0: i32, %arg1: i32) -> (i32, i32) {
    %c0_i32 = arith.constant 0 : i32
    %c0_i32_0 = arith.constant 0 : i32
    return %arg1, %c0_i32 : i32, i32
  }
  func.func @transform_3(%arg0: i32, %arg1: i32) -> (i32, i32) {
    %c0_i32 = arith.constant 0 : i32
    return %arg0, %arg1 : i32, i32
  }
}

</mosaic_0001>

<bundles_post_ra>
// kernel: _integer_loss_impl.1
= control target key start
LH: loop header
LB: loop body
LE: loop exit
PB: predicated region body
PF: predicated region fallthrough
CT: control target
= control target key end

     0   :  { %v146_v3 = vmov 0.0   ;;  %vm147_vm0 = vmmov 0   ;;  %s190_s0 = inlined_call_operand.vmem [shape: f32[1,128], index: 0, kind: input, shape index: {}]   ;;  %s191_s1 = inlined_call_operand.vmem [shape: f32[8,128], index: 1, kind: input, shape index: {}, may-alias: {1,2}]   ;;  %s192_s2 = inlined_call_operand.vmem [shape: f32[8,128], index: 2, kind: input, shape index: {}, may-alias: {1,2}]   ;;  %s193_s3 = inlined_call_operand.hbm [shape: f32[8,8], index: 3, kind: output, shape index: {}]  }
   0x1   :  { %v17_v0 = vld [vmem:[%s192_s2] sm:$0xff]  ;;  %114 = vmatprep.subr.mxu0 %v146_v3  ;;  %116 = vmatprep.mubr.msk.f32.mxu0 %vm147_vm0, %v146_v3 }
   0x2   :  { %v111_v1 = vld [vmem:[%s190_s0] ss:$0 sm:$0xff] }
   0x3   :  { %v16_v2 = vld [vmem:[%s191_s1] sm:$0xff] }
   0x4   :  { %v24_v4 = vmul.f32 %v111_v1, %v16_v2 }
   0x5   :  { %8 = vsyncpa [#allocation3], 0  ;;  %115 = vmatpush3.xpose.msra.mxu0 %v17_v0  ;;  %s148_s18 = smov [#allocation2]   ;;  %vm95_vm1 = vcmask 64512  }
   0x6   :  { %s103_s19 = sshll.u32 %s148_s18, 4  ;;  %s104_s19 = int_to_ptr.vmem [resolvable:$true] %s103_s19 }
   0x7   :  { %s122_s0 = scalar_lea.vmem %s104_s19, 128  ;;  %p127_p1 = scmp.lt.s32.totalorder %s104_s19, %s104_s19 }
   0x8   :  { %117 = vmatmul.mubr.f32.vlgmr.msra.gmra.mrb[0].mxu0 %v24_v4  ;;  %p123_p0 = scmp.ne.s32.totalorder %s104_s19, %s122_s0  ;;  %p128_p2 = scmp.lt.s32.totalorder %s122_s0, %s122_s0 }
   0xa   :  { %p129_p3 = por %p128_p2, %p127_p1 }
   0xc   :  { %p130_p4 = pnand %p129_p3, %p123_p0 }
  0xdb   :  { %v91_v5 = vpop.f32.mrb[0].mxu0 }
  0xdc   :  { %96 = vst.msk [vmem:[#allocation2] sm:$0xff] %vm95_vm1, %v91_v5  ;;  %v118_v6 = vpop.f32.mrb[1].mxu0 }
  0xdd   :  { %133 = shalt.err (!%p130_p4)
}
  0xde   :  { %s134_s20 = scalar_lea.hbm %s193_s3, 128 }
  0xdf   :  { %p135_p5 = scmp.ne.s32.totalorder %s193_s3, %s134_s20  ;;  %p138_p6 = scmp.lt.u32.totalorder %s134_s20, %s193_s3 }
  0xe1   :  { %p140_p7 = pnand %p138_p6, %p135_p5 }
  0xe3   :  { %143 = shalt.err (!%p140_p7)
}
  0xe4   :  { %106 = dma.vmem_to_hbm [thread:$0]  %s104_s19, 128, %s193_s3, [#allocation3]  }
  0xe5   :  { %144 = dma.done.wait [#allocation3], 128  }
  0xe6   :  { %145 = vsyncadd [#allocation3], 4294967168 }
  0xe7   :  { %110 = vsyncpa [#allocation3], 1 }

</bundles_post_ra>
